<compile_context>
chip_gen: v7x
topology: tpu7x:2x2x1
jax: 0.10.0
libtpu: 0.0.40
codegen_flags: <defaults>
</compile_context>

<pallas_src>
import functools
import math

import jax
import jax.numpy as jnp
from jax.experimental import pallas as pl
from jax.experimental.pallas import tpu as pltpu


def build_positional_table(max_seq_len: int, embed_dim: int) -> jnp.ndarray:
    """Reproduce the PyTorch double loop exactly.

    For column j (0-indexed):
      j even -> sin(pos / 10000 ** (2*j/d))        (pe[pos, i],   i = j)
      j odd  -> cos(pos / 10000 ** (2*j/d))        (pe[pos, i+1], i+1 = j)
    i.e. both branches use the column's OWN index in the exponent, matching
    `2 * i` / `2 * (i + 1)` in the reference module.
    """
    pos = jnp.arange(max_seq_len, dtype=jnp.float32)[:, None]        # (L, 1)
    j = jnp.arange(embed_dim, dtype=jnp.float32)[None, :]            # (1, D)
    angle = pos / jnp.power(10000.0, 2.0 * j / float(embed_dim))     # (L, D)
    pe = jnp.where((jnp.arange(embed_dim)[None, :] % 2) == 0,
                   jnp.sin(angle), jnp.cos(angle))
    return pe[None, :, :]                                            # (1, L, D)


def _pos_embed_kernel(x_ref, pe_ref, o_ref, *, scale):
    # Kernel sees 2-D (TS, D) tiles (leading size-1 batch dim squeezed away).
    # One VPU FMA per element; purely HBM-bandwidth bound.
    o_ref[...] = x_ref[...] * scale + pe_ref[...]


def _pick_seq_tile(S, D, itemsize, target_bytes=4 * 1024 * 1024):
    """Largest seq tile that keeps one block <= ~4 MiB; multiple of 8 or full S."""
    if S * D * itemsize <= target_bytes:
        return S
    ts = (target_bytes // (D * itemsize)) // 8 * 8
    return int(max(8, min(ts, S)))


def positional_embedding(x: jnp.ndarray, pe: jnp.ndarray, embed_dim: int) -> jnp.ndarray:
    """x: (B, S, D); pe: (1, max_seq_len, D) with max_seq_len >= S."""
    B, S, D = x.shape
    assert D == embed_dim
    assert pe.shape[0] == 1 and pe.shape[2] == D and pe.shape[1] >= S

    scale = math.sqrt(embed_dim)
    itemsize = jnp.dtype(x.dtype).itemsize

    TS = _pick_seq_tile(S, D, itemsize)
    n_seq = pl.cdiv(S, TS)

    block_bytes = TS * D * itemsize
    # x, pe, out each double-buffered -> 6 live buffers; add headroom, clamp.
    vmem_limit = int(min(max(8 * block_bytes, 4 * 1024 * 1024), 64 * 1024 * 1024))

    kernel = functools.partial(_pos_embed_kernel, scale=scale)

    grid_spec = pltpu.PrefetchScalarGridSpec(
        num_scalar_prefetch=0,
        # Batch is the innermost grid axis: pe's block index is constant
        # across it, so its DMA is skipped for all but the first batch row
        # of every seq tile.
        grid=(n_seq, B),
        in_specs=[
            pl.BlockSpec((pl.Squeezed(), TS, D), lambda s, b: (b, s, 0)),   # x
            pl.BlockSpec((pl.Squeezed(), TS, D), lambda s, b: (0, s, 0)),   # pe
        ],
        out_specs=pl.BlockSpec((pl.Squeezed(), TS, D), lambda s, b: (b, s, 0)),
    )

    return pl.pallas_call(
        kernel,
        out_shape=jax.ShapeDtypeStruct((B, S, D), x.dtype),
        grid_spec=grid_spec,
        compiler_params=pltpu.CompilerParams(
            dimension_semantics=("parallel", "parallel"),
            vmem_limit_bytes=vmem_limit,
        ),
    )(x, pe)


def _reference(x, pe, embed_dim):
    return x * math.sqrt(embed_dim) + pe[:, : x.shape[1], :]


if __name__ == "__main__":
    max_seq_len = 16
    embed_dim = 32
    batch, seq = 2, 8

    pe = build_positional_table(max_seq_len, embed_dim)

    key = jax.random.PRNGKey(0)
    x = jax.random.normal(key, (batch, seq, embed_dim), dtype=jnp.float32)

    out = positional_embedding(x, pe, embed_dim)
    out = jax.block_until_ready(out)

    ref = _reference(x, pe, embed_dim)
    assert out.shape == (batch, seq, embed_dim)
    assert jnp.allclose(out, ref, atol=1e-5, rtol=1e-5)

    print("KERNEL_OK")
</pallas_src>

<mosaic_0001>
module attributes {stable_mosaic.version = 11 : i64} {
  func.func @_pos_embed_kernel(%arg0: i32, %arg1: i32, %arg2: memref<1x8x32xf32, #tpu.memory_space<vmem>>, %arg3: memref<1x8x32xf32, #tpu.memory_space<vmem>>, %arg4: memref<1x8x32xf32, #tpu.memory_space<vmem>>) attributes {dimension_semantics = [#tpu.dimension_semantics<parallel>, #tpu.dimension_semantics<parallel>], iteration_bounds = array<i64: 1, 2>, scalar_prefetch = 0 : i64, scratch_operands = 0 : i64, tpu.core_type = #tpu.core_type<tc>, window_params = [{transform_indices = @transform_0, window_bounds = array<i64: 1, 8, 32>}, {transform_indices = @transform_1, window_bounds = array<i64: 1, 8, 32>}, {transform_indices = @transform_2, window_bounds = array<i64: 1, 8, 32>}]} {
    %c0 = arith.constant 0 : index
    %c0_0 = arith.constant 0 : index
    %c0_1 = arith.constant 0 : index
    %0 = vector.load %arg2[%c0, %c0_0, %c0_1] : memref<1x8x32xf32, #tpu.memory_space<vmem>>, vector<1x8x32xf32>
    %1 = vector.shape_cast %0 : vector<1x8x32xf32> to vector<8x32xf32>
    %cst = arith.constant 5.65685415 : f32
    %2 = vector.broadcast %cst : f32 to vector<8x32xf32>
    %3 = arith.mulf %1, %2 : vector<8x32xf32>
    %c0_2 = arith.constant 0 : index
    %c0_3 = arith.constant 0 : index
    %c0_4 = arith.constant 0 : index
    %4 = vector.load %arg3[%c0_2, %c0_3, %c0_4] : memref<1x8x32xf32, #tpu.memory_space<vmem>>, vector<1x8x32xf32>
    %5 = vector.shape_cast %4 : vector<1x8x32xf32> to vector<8x32xf32>
    %6 = arith.addf %3, %5 : vector<8x32xf32>
    %c0_5 = arith.constant 0 : index
    %c0_6 = arith.constant 0 : index
    %c0_7 = arith.constant 0 : index
    %7 = vector.load %arg4[%c0_5, %c0_6, %c0_7] : memref<1x8x32xf32, #tpu.memory_space<vmem>>, vector<1x8x32xf32>
    %8 = vector.shape_cast %7 : vector<1x8x32xf32> to vector<8x32xf32>
    %9 = vector.shape_cast %6 : vector<8x32xf32> to vector<1x8x32xf32>
    tpu.vector_store %arg4[%c0_5, %c0_6, %c0_7], %9 {strides = array<i32>} : memref<1x8x32xf32, #tpu.memory_space<vmem>>, vector<1x8x32xf32>,
    return
  }
  func.func @transform_0(%arg0: i32, %arg1: i32) -> (i32, i32, i32) {
    %c0_i32 = arith.constant 0 : i32
    %c0_i32_0 = arith.constant 0 : i32
    return %arg1, %arg0, %c0_i32 : i32, i32, i32
  }
  func.func @transform_1(%arg0: i32, %arg1: i32) -> (i32, i32, i32) {
    %c0_i32 = arith.constant 0 : i32
    %c0_i32_0 = arith.constant 0 : i32
    %c0_i32_1 = arith.constant 0 : i32
    return %c0_i32, %arg0, %c0_i32_0 : i32, i32, i32
  }
  func.func @transform_2(%arg0: i32, %arg1: i32) -> (i32, i32, i32) {
    %c0_i32 = arith.constant 0 : i32
    %c0_i32_0 = arith.constant 0 : i32
    return %arg1, %arg0, %c0_i32 : i32, i32, i32
  }
}

</mosaic_0001>

<bundles_post_ra>
// kernel: tpu_custom_call.1
= control target key start
LH: loop header
LB: loop body
LE: loop exit
PB: predicated region body
PF: predicated region fallthrough
CT: control target
= control target key end

     0   :  { %7 = vsyncpa [#allocation3], 0  ;;  %s780_s0 = inlined_call_operand.hbm [shape: f32[2,8,32], index: 0, kind: input, shape index: {}]   ;;  %s781_s1 = inlined_call_operand.hbm [shape: f32[1,16,32], index: 1, kind: input, shape index: {}]   ;;  %s782_s2 = inlined_call_operand.hbm [shape: f32[2,8,32], index: 2, kind: output, shape index: {}]  }
   0x1   :  { %9 = vsyncpa [#allocation3 + $0x1], 0 }
   0x2   :  { %10 = vsyncpa [#allocation6], 0 }
   0x3   :  { %11 = vsyncpa [#allocation4], 0 }
   0x4   :  { %13 = vsyncpa [#allocation4 + $0x1], 0  ;;  %s561_s9 = smov 0   ;;  %s563_s10 = smov 0  }
   0x5   :  { %s565_s11 = smov 0   ;;  %s567_s12 = smov 0  }
   0x6   :  { %s569_s13 = smov 0   ;;  %s571_s14 = smov 0  }
   0x7 LB: > { %s309_s15 = sadd.s32 4294967295, %s541_s14   ;;  %s310_s16 = sadd.s32 4294967294, %s541_s14   ;;  %s541_s14 = sphi %s571_s14, %s19_s14   ;;  %s537_s13 = sphi %s569_s13, %s807_s13   ;;  %s533_s12 = sphi %s567_s12, %s806_s12   ;;  %s529_s11 = sphi %s565_s11, %s805_s11   ;;  %s525_s10 = sphi %s563_s10, %s804_s10   ;;  %s521_s9 = sphi %s561_s9, %s803_s9  }
   0x8   : > { %p53_p0 = scmp.ne.s32.totalorder %s525_s10, %s521_s9  ;;  %p595_p1 = scmp.eq.s32.totalorder %s309_s15, 0 }
   0x9   : > { %p599_p2 = scmp.eq.s32.totalorder %s309_s15, 1  ;;  %p111_p3 = scmp.eq.s32.totalorder %s310_s16, 1 }
   0xa   : > { %s787_s17 = scalar_select %p595_p1, 1, 0 }
   0xb   : > { %s788_s18 = scalar_select %p599_p2, 1, 0 }
   0xc   : > { %p605_p4 = por %p595_p1, %p53_p0  ;;  %p311_p5 = scmp.ge.s32.totalorder %s541_s14, 1 }
   0xd   : > { %p610_p6 = por %p111_p3, %p53_p0  ;;  %p118_p7 = scmp.lt.s32.totalorder %s541_s14, 3 }
   0xe   : > { %s789_s19 = scalar_select %p605_p4, 1, 0 }
   0xf   : > { %s790_s20 = scalar_select %p610_p6, 1, 0 }
  0x10   : > { %p615_p8 = pnand %p311_p5, %p118_p7  ;;  %s543_s22 = smov [#allocation5]  }
  0x11   : > { %s133_s23 = sshll.u32 %s543_s22, 4  ;;  %s28_s25 = sadd.s32 1, %s537_s13  ;;  %s134_s23 = int_to_ptr.vmem [resolvable:$true] %s133_s23 }
  0x12   : > { %s791_s21 = scalar_select %p615_p8, 1, 0 }
  0x13   : > { %p332_p10 = pneg %p615_p8  ;;  %s40_s26 = sadd.s32 1, %s529_s11 }
  0x14   : > { %p630_p12 = scmp.ge.s32.totalorder %s28_s25, 2  ;;  %s397_s30 = scalar_lea.hbm %s781_s1, 128 }
  0x15   : > { %p624_p11 = pnand %p332_p10, %p595_p1  ;;  %p398_p13 = scmp.ne.s32.totalorder %s781_s1, %s397_s30 }
  0x16   : > { %s793_s27 = scalar_select %p630_p12, 1, 0 }
  0x17   : > { %p399_p0 = pneg %p624_p11  ;;  %s402_s7 = scalar_lea.hbm %s781_s1, 256 }
  0x18   : > { %p403_p7 = scmp.lt.u32.totalorder %s402_s7, %s397_s30  ;;  %p404_p10 = scmp.lt.u32.totalorder %s397_s30, %s781_s1 }
  0x19   : > { %p400_p3 = pnand %p399_p0, %p398_p13 }
  0x1a   : > { %p405_p9 = por %p404_p10, %p403_p7 }
  0x1b   : > { %p401_p5 = pneg %p400_p3 }
  0x1d   : > { %p406_p6 = pnand %p405_p9, %p401_p5 }
  0x1f   : > { %409 = shalt.err (!%p406_p6)
}
  0x20   : > { %s410_s16 = scalar_lea.vmem %s134_s23, 128  ;;  %p418_p2 = scmp.lt.s32.totalorder %s134_s23, %s134_s23 }
  0x21   : > { %p411_p1 = scmp.ne.s32.totalorder %s134_s23, %s410_s16  ;;  %p419_p12 = scmp.lt.s32.totalorder %s410_s16, %s410_s16 }
  0x23   : > { %p413_p4 = pnand %p411_p1, %p399_p0  ;;  %p420_p13 = por %p419_p12, %p418_p2 }
  0x25   : > { %p414_p8 = pneg %p413_p4 }
  0x27   : > { %p421_p3 = pnand %p420_p13, %p414_p8 }
  0x29   : > { %424 = shalt.err (!%p421_p3)
}
  0x2a   : > { %335 = dma.hbm_to_vmem [thread:$0]  (!%p624_p11), %s781_s1, 128, %s134_s23, [#allocation6]  }
  0x2b   : > { %p794_p1 = scmp.ne.s32.totalorder %s793_s27, 0  ;;  %p47_p2 = scmp.ne.s32.totalorder %s529_s11, %s525_s10 }
  0x2c   : > { %p48_p4 = scmp.eq.s32.totalorder %s541_s14, 0  ;;  %p345_p6 = scmp.lt.s32.totalorder %s541_s14, 2 }
  0x2d   : > { %s809_s25 = smov (%p794_p1, %s28_s25), 0  ;;  %p795_p12 = scmp.ne.s32.totalorder %s788_s18, 0 }
  0x2e   : > { %s35_s24 = ssub.s32 %s537_s13, %s809_s25  ;;  %p49_p9 = por %p48_p4, %p47_p2 }
  0x2f   : > { %p38_p8 = scmp.eq.s32.totalorder %s35_s24, 0  ;;  %p665_p0 = por %p795_p12, %p47_p2 }
  0x30   : > { %s144_s30 = sand.u32 1, %s529_s11   ;;  %s315_s27 = sshll.u32 %s537_s13, 7 }
  0x31   : > { %s673_s3 = scalar_select %p38_p8, %s529_s11, %s40_s26  }
  0x32   : > { %s314_s23 = sshll.u32 %s144_s30, 3  ;;  %s679_s6 = scalar_lea.hbm %s780_s0, %s315_s27 }
  0x33   : > { %s148_s18 = scalar_lea.vmem [#allocation2], %s314_s23  ;;  %p683_p11 = pnand %p345_p6, %p49_p9 }
  0x34   : > { %s156_s7 = sshll.u32 %s148_s18, 4  ;;  %s145_s26 = scalar_lea.sflag [#allocation3], %s144_s30  ;;  %s681_s7 = int_to_ptr.vmem [resolvable:$true] %s156_s7 }
  0x35   : > { %s425_s15 = scalar_lea.hbm %s679_s6, 128  ;;  %p427_p7 = pneg %p683_p11 }
  0x36   : > { %p426_p5 = scmp.ne.s32.totalorder %s679_s6, %s425_s15  ;;  %s430_s28 = scalar_lea.hbm %s780_s0, 256 }
  0x37   : > { %p431_p3 = scmp.lt.u32.totalorder %s679_s6, %s780_s0  ;;  %p432_p1 = scmp.lt.u32.totalorder %s430_s28, %s425_s15 }
  0x38   : > { %p428_p10 = pnand %p427_p7, %p426_p5  ;;  %p434_p4 = scmp.lt.u32.totalorder %s425_s15, %s679_s6 }
  0x39   : > { %p433_p2 = por %p432_p1, %p431_p3 }
  0x3a   : > { %p429_p13 = pneg %p428_p10 }
  0x3b   : > { %p435_p6 = por %p434_p4, %p433_p2 }
  0x3d   : > { %p436_p8 = pnand %p435_p6, %p429_p13 }
  0x3f   : > { %439 = shalt.err (!%p436_p8)
}
  0x40   : > { %s440_s30 = scalar_lea.vmem %s681_s7, 128  ;;  %s544_s27 = smov [#allocation2]  }
  0x41   : > { %p441_p9 = scmp.ne.s32.totalorder %s681_s7, %s440_s30  ;;  %s445_s4 = sshll.u32 %s544_s27, 4  ;;  %s446_s4 = int_to_ptr.vmem [resolvable:$false] %s445_s4 }
  0x42   : > { %s447_s5 = scalar_lea.vmem %s446_s4, 256  ;;  %p448_p10 = scmp.lt.s32.totalorder %s681_s7, %s446_s4 }
  0x43   : > { %p443_p12 = pnand %p441_p9, %p427_p7  ;;  %p449_p3 = scmp.lt.s32.totalorder %s447_s5, %s440_s30 }
  0x45   : > { %p444_p5 = pneg %p443_p12  ;;  %p450_p1 = por %p449_p3, %p448_p10 }
  0x47   : > { %p451_p2 = pnand %p450_p1, %p444_p5 }
  0x49   : > { %454 = shalt.err (!%p451_p2)
}
  0x4a   : > { %339 = dma.hbm_to_vmem [thread:$0]  (!%p683_p11), %s679_s6, 128, %s681_s7, %s145_s26  }
  0x4b   : > { %p798_p13 = scmp.ne.s32.totalorder %s791_s21, 0 }
  0x4c   : > { %s715_s18 = sand.u32 (!%p798_p13), 1, %s525_s10   ;;  %p799_p7 = scmp.ne.s32.totalorder (!%p798_p13), %s789_s19, 0 }
  0x4d   : > { %165 = sbr.rel (%p798_p13) target bundleno = 113 (0x71), region = 28  ;;  %s317_s15 = sshll.u32 (!%p798_p13), %s715_s18, 3 }
  0x4e   : > { %s168_s16 = scalar_lea.sflag (!%p798_p13), [#allocation3], %s715_s18  ;;  %s171_s22 = scalar_lea.vmem (!%p798_p13), [#allocation2], %s317_s15 }
  0x54   : > { %508 = dma.done.wait (%p799_p7), %s168_s16, 128  }
  0x55   : > { %510 = vsyncadd (%p799_p7), %s168_s16, 4294967168  ;;  %p800_p4 = scmp.ne.s32.totalorder %s787_s17, 0 }
  0x57   : > { %512 = dma.done.wait (%p800_p4), [#allocation6], 128  }
  0x58   : > { %514 = vsyncadd (%p800_p4), [#allocation6], 4294967168  ;;  %v196_v0 = vld [vmem:[%s171_s22] sm:$0xff]  ;;  %v198_v1 = vld [vmem:[#allocation5] sm:$0xff]  ;;  %s195_s21 = scalar_lea.vmem [#allocation7], %s317_s15  ;;  %s321_s7 = sshll.u32 %s533_s12, 7 }
  0x59   : > { %s217_s6 = sshll.u32 %s195_s21, 4  ;;  %v197_v2 = vmul.f32 5.656854, %v196_v0  ;;  %vm200_vm0 = vcmask 261120   ;;  %s733_s17 = scalar_lea.hbm %s782_s2, %s321_s7  ;;  %s728_s6 = int_to_ptr.vmem [resolvable:$true] %s217_s6 }
  0x5a   : > { %s203_s26 = scalar_lea.sflag [#allocation4], %s715_s18  ;;  %s455_s28 = scalar_lea.vmem %s728_s6, 128 }
  0x5b   : > { %v199_v3 = vadd.f32 %v198_v1, %v197_v2  ;;  %p456_p11 = scmp.ne.s32.totalorder %s728_s6, %s455_s28  ;;  %s545_s12 = smov [#allocation7]  }
  0x5c   : > { %s459_s24 = sshll.u32 %s545_s12, 4  ;;  %s460_s24 = int_to_ptr.vmem [resolvable:$false] %s459_s24 }
  0x5d   : > { %201 = vst.msk [vmem:[%s195_s21] sm:$0xff] %vm200_vm0, %v199_v3  ;;  %p457_p6 = pnand %p456_p11, %p665_p0  ;;  %s461_s23 = scalar_lea.vmem %s460_s24, 256 }
  0x5e   : > { %p462_p9 = scmp.lt.s32.totalorder %s728_s6, %s460_s24  ;;  %p463_p12 = scmp.lt.s32.totalorder %s461_s23, %s455_s28 }
  0x5f   : > { %p458_p8 = pneg %p457_p6 }
  0x60   : > { %p464_p5 = por %p463_p12, %p462_p9 }
  0x62   : > { %p465_p10 = pnand %p464_p5, %p458_p8 }
  0x64   : > { %468 = shalt.err (!%p465_p10)
}
  0x65   : > { %s469_s30 = scalar_lea.hbm %s733_s17, 128  ;;  %s473_s5 = scalar_lea.hbm %s782_s2, 256 }
  0x66   : > { %p470_p3 = scmp.ne.s32.totalorder %s733_s17, %s469_s30  ;;  %p474_p13 = scmp.lt.u32.totalorder %s733_s17, %s782_s2 }
  0x67   : > { %p475_p7 = scmp.lt.u32.totalorder %s473_s5, %s469_s30  ;;  %p477_p11 = scmp.lt.u32.totalorder %s469_s30, %s733_s17 }
  0x68   : > { %p471_p1 = pnand %p470_p3, %p665_p0 }
  0x69   : > { %p476_p4 = por %p475_p7, %p474_p13 }
  0x6a   : > { %p472_p2 = pneg %p471_p1 }
  0x6b   : > { %p478_p6 = por %p477_p11, %p476_p4 }
  0x6d   : > { %p479_p8 = pnand %p478_p6, %p472_p2 }
  0x6f   : > { %482 = shalt.err (!%p479_p8)
}
  0x70   : > { %330 = dma.vmem_to_hbm [thread:$0]  (%p665_p0), %s728_s6, 128, %s733_s17, %s203_s26  }
  0x71 PF: > { %s229_s16 = sand.u32 1, %s521_s9   ;;  %p801_p9 = scmp.ne.s32.totalorder %s790_s20, 0 }
  0x72   : > { %p802_p12 = scmp.ge.s32.totalorder %s541_s14, 2  ;;  %s230_s22 = scalar_lea.sflag [#allocation4], %s229_s16 }
  0x74   : > { %p341_p5 = pnand %p802_p12, %p801_p9 }
  0x76   : > { %516 = dma.done.wait (!%p341_p5), %s230_s22, 128  }
  0x77   : > { %518 = vsyncadd (!%p341_p5), %s230_s22, 4294967168  ;;  %s19_s14 = sadd.s32 1, %s541_s14   ;;  %s803_s9 = smov %s525_s10 }
  0x78   : > { %p16_p10 = scmp.ge.s32.totalorder %s19_s14, 4   ;;  %s804_s10 = smov %s529_s11 }
  0x79   : > { %s805_s11 = smov %s673_s3  ;;  %s806_s12 = smov %s537_s13 }
  0x7a   : > { %s807_s13 = smov %s809_s25  ;;  %18 = sbr.rel (!%p16_p10) target bundleno = 7 (0x7), region = 78 }
  0x81   :  { %235 = vsyncpa [#allocation3], 1 }
  0x82   :  { %237 = vsyncpa [#allocation3 + $0x1], 1 }
  0x83   :  { %238 = vsyncpa [#allocation6], 1 }
  0x84   :  { %239 = vsyncpa [#allocation4], 1 }
  0x85   :  { %241 = vsyncpa [#allocation4 + $0x1], 1 }

</bundles_post_ra>
